<compile_context>
chip_gen: v5e
topology: v5e:2x2
jax: 0.10.0
libtpu: 0.0.40
codegen_flags: <defaults>
</compile_context>

<pallas_src>
import functools

import numpy as np
import jax
import jax.numpy as jnp
from jax.experimental import pallas as pl
from jax.experimental.pallas import tpu as pltpu

LEAKY_SLOPE = 0.2


def _apply_act(y, act):
    """Elementwise activation inside the kernel (VPU/EUP), f32 in / f32 out."""
    if act == "leaky_relu":
        return jnp.where(y >= 0, y, LEAKY_SLOPE * y)
    if act == "relu":
        return jnp.maximum(y, 0.0)
    if act == "sigmoid":
        # single native EUP tanh, exact [0, 1] range
        return 0.5 * (jnp.tanh(0.5 * y) + 1.0)
    if act == "tanh":
        return jnp.tanh(y)
    if act == "elu":
        return jnp.where(y >= 0, y, jnp.exp(jnp.minimum(y, 0.0)) - 1.0)
    return y  # 'none'


# ----------------------------------------------------------------------------
# Single fused Pallas kernel for the whole decoder.
#
# Activation layout inside the kernel: 2-D (H*Bp, C*W) arrays, row = ih*Bp + b,
# col = ci*W + iw.  A ConvT(k=4, s=2, p=1) layer then becomes
#   even output row 2i  :  x[i-1] @ A3 + x[i]   @ A1   (+ skip pair @ vstack(A3s, A1s))
#   odd  output row 2i+1:  x[i]   @ A2 + x[i+1] @ A0   (+ skip pair @ vstack(A2s, A0s))
# where A_kh[(ci,iw),(co,ow)] = W[ci,co,kh, ow-2*iw+1] (width taps baked in).
# Row shifts are tile-aligned (blocks of Bp=multiple-of-8 rows) slices + concats.
# ----------------------------------------------------------------------------
def _build_decoder_kernel(*, mixing, use_skip, last_activation, Bp):
    def kernel(*refs):
        o_ref = refs[-1]
        it = iter(refs[:-1])
        z1_ref, z2_ref = next(it), next(it)
        if use_skip:
            s1e_ref, s1o_ref, s2e_ref, s2o_ref = next(it), next(it), next(it), next(it)
        if mixing == "concat":
            m0a_ref, m0b_ref = next(it), next(it)
        else:
            m0_ref = next(it)
        b0_ref, a1h_ref = next(it), next(it)
        if use_skip:
            b1se_ref, b1so_ref = next(it), next(it)
        b1_ref, a2h_ref = next(it), next(it)
        if use_skip:
            b2se_ref, b2so_ref = next(it), next(it)
        b2_ref = next(it)

        f32 = jnp.float32
        wd = a1h_ref.dtype  # bf16 weights

        def shift_prev(x):  # row i <- row i-1 (per Bp-row spatial block), zeros at i=0
            z = jnp.zeros((Bp, x.shape[1]), f32)
            return jnp.concatenate([z, x[:-Bp]], axis=0)

        def shift_next(x):  # row i <- row i+1, zeros at i=H-1
            z = jnp.zeros((Bp, x.shape[1]), f32)
            return jnp.concatenate([x[Bp:], z], axis=0)

        def interleave(ye, yo):  # rows (2i, b) <- ye block i ; rows (2i+1, b) <- yo block i
            nblk = ye.shape[0] // Bp
            blocks = []
            for i in range(nblk):
                blocks.append(ye[i * Bp:(i + 1) * Bp])
                blocks.append(yo[i * Bp:(i + 1) * Bp])
            return jnp.concatenate(blocks, axis=0)

        def convt(h, a_ref, bias_ref, se=None, so=None, bse_ref=None, bso_ref=None):
            hp = shift_prev(h).astype(wd)
            hn = shift_next(h).astype(wd)
            hb = h.astype(wd)
            ye = (jnp.dot(hp, a_ref[3], preferred_element_type=f32)
                  + jnp.dot(hb, a_ref[1], preferred_element_type=f32)
                  + bias_ref[...])
            yo = (jnp.dot(hb, a_ref[2], preferred_element_type=f32)
                  + jnp.dot(hn, a_ref[0], preferred_element_type=f32)
                  + bias_ref[...])
            if se is not None:
                ye = ye + jnp.dot(se, bse_ref[...], preferred_element_type=f32)
                yo = yo + jnp.dot(so, bso_ref[...], preferred_element_type=f32)
            return ye, yo

        # ---- mixing + first_upconv (1x1 -> 4x4 pure linear) + LeakyReLU ----
        if mixing == "concat":
            za = z1_ref[...].astype(wd)
            zb = z2_ref[...].astype(wd)
            blocks = [jnp.dot(za, m0a_ref[kh], preferred_element_type=f32)
                      + jnp.dot(zb, m0b_ref[kh], preferred_element_type=f32)
                      for kh in range(4)]
        else:
            z = (z1_ref[...] * z2_ref[...]).astype(wd)
            blocks = [jnp.dot(z, m0_ref[kh], preferred_element_type=f32)
                      for kh in range(4)]
        h1 = _apply_act(jnp.concatenate(blocks, axis=0) + b0_ref[...], "leaky_relu")

        # ---- conv[0]: ConvT(., 8, k4 s2 p1) with skip0, LeakyReLU ----
        if use_skip:
            ye, yo = convt(h1, a1h_ref, b1_ref,
                           s1e_ref[...], s1o_ref[...], b1se_ref, b1so_ref)
        else:
            ye, yo = convt(h1, a1h_ref, b1_ref)
        h2 = interleave(_apply_act(ye, "leaky_relu"), _apply_act(yo, "leaky_relu"))

        # ---- conv[1]: ConvT(., ny, k4 s2 p1) with skip1, last activation ----
        if use_skip:
            ye, yo = convt(h2, a2h_ref, b2_ref,
                           s2e_ref[...], s2o_ref[...], b2se_ref, b2so_ref)
        else:
            ye, yo = convt(h2, a2h_ref, b2_ref)
        out = interleave(_apply_act(ye, last_activation),
                         _apply_act(yo, last_activation))
        o_ref[...] = out.astype(o_ref.dtype)

    return kernel


# ----------------------------------------------------------------------------
# Host-side parameter packing (numpy): per-tap phase matrices, no spatial-H inflation.
# ----------------------------------------------------------------------------
def _phase_matrices(w, W_in):
    """A[kh] with A[kh][(ci,iw),(co,ow)] = w[ci,co,kh, ow-2*iw+1] for ConvT k4 s2 p1."""
    w = np.asarray(w, np.float32)
    Cin, Cout, KH, KW = w.shape
    OW = 2 * W_in
    A = np.zeros((KH, Cin * W_in, Cout * OW), np.float32)
    ci = np.arange(Cin)[:, None]
    co = np.arange(Cout)[None, :]
    for kh in range(KH):
        for iw in range(W_in):
            for kw in range(KW):
                ow = 2 * iw - 1 + kw
                if 0 <= ow < OW:
                    A[kh, ci * W_in + iw, co * OW + ow] = w[:, :, kh, kw]
    return A


def pack_decoder_params(w0, b0, w1, b1, w2, b2, *, mixing="mul", use_skip=True,
                        weight_dtype=jnp.bfloat16):
    """w*: PyTorch ConvTranspose2d weights (Cin, Cout, KH, KW); b*: (Cout,)."""
    w0 = np.asarray(w0, np.float32)
    C1 = w0.shape[1]
    C2 = np.asarray(w1).shape[1]
    NY = np.asarray(w2).shape[1]

    packed = {}
    # first_upconv on a 1x1 input: oh=kh, ow=kw -> M0[kh, cz, ci*4+kw]
    M0_full = np.transpose(w0, (2, 0, 1, 3)).reshape(4, w0.shape[0], C1 * 4)
    if mixing == "concat":
        nz = w0.shape[0] // 2
        packed["M0a"] = jnp.asarray(M0_full[:, :nz, :], weight_dtype)
        packed["M0b"] = jnp.asarray(M0_full[:, nz:, :], weight_dtype)
    else:
        packed["M0"] = jnp.asarray(M0_full, weight_dtype)
    packed["b0"] = jnp.asarray(np.repeat(np.asarray(b0, np.float32), 4)[None, :])

    # conv[0]: input spatial 4x4, channels = C1 (+ skip0 channels)
    A1 = _phase_matrices(w1, 4)
    packed["A1h"] = jnp.asarray(A1[:, :C1 * 4, :], weight_dtype)
    if use_skip:
        A1s = A1[:, C1 * 4:, :]
        packed["B1se"] = jnp.asarray(np.concatenate([A1s[3], A1s[1]], axis=0), weight_dtype)
        packed["B1so"] = jnp.asarray(np.concatenate([A1s[2], A1s[0]], axis=0), weight_dtype)
    packed["b1"] = jnp.asarray(np.repeat(np.asarray(b1, np.float32), 8)[None, :])

    # conv[1]: input spatial 8x8, channels = C2 (+ skip1 channels)
    A2 = _phase_matrices(w2, 8)
    packed["A2h"] = jnp.asarray(A2[:, :C2 * 8, :], weight_dtype)
    if use_skip:
        A2s = A2[:, C2 * 8:, :]
        packed["B2se"] = jnp.asarray(np.concatenate([A2s[3], A2s[1]], axis=0), weight_dtype)
        packed["B2so"] = jnp.asarray(np.concatenate([A2s[2], A2s[0]], axis=0), weight_dtype)
    packed["b2"] = jnp.asarray(np.repeat(np.asarray(b2, np.float32), 16)[None, :])
    del NY
    return packed


def _prep_skip_pairs(skip, Bp):
    """skip (B,Cs,H,W) -> row-pair tensors S_e, S_o of shape (H*Bp, 2*Cs*W), bf16.

    Row index = i*Bp + b, columns = [row(i-1)|row(i)] for S_e, [row(i)|row(i+1)] for S_o.
    Pure host-side layout plumbing (keeps the skip concat out of the kernel)."""
    B, Cs, H, W = skip.shape
    rows = jnp.transpose(skip, (2, 0, 1, 3)).reshape(H, B, Cs * W)
    rows = jnp.pad(rows, ((0, 0), (0, Bp - B), (0, 0)))
    zrow = jnp.zeros((1, Bp, Cs * W), rows.dtype)
    prev = jnp.concatenate([zrow, rows[:-1]], axis=0)
    nxt = jnp.concatenate([rows[1:], zrow], axis=0)
    s_e = jnp.concatenate([prev, rows], axis=-1).reshape(H * Bp, 2 * Cs * W)
    s_o = jnp.concatenate([rows, nxt], axis=-1).reshape(H * Bp, 2 * Cs * W)
    return s_e.astype(jnp.bfloat16), s_o.astype(jnp.bfloat16)


# ----------------------------------------------------------------------------
# BaseDecoder.forward equivalent (single fused pallas_call).
# ----------------------------------------------------------------------------
def base_decoder_forward(z1, z2, skip, packed, *, use_skip, mixing, last_activation):
    # Mirrors: assert skip is None and (not self.skip) or (self.skip and skip is not None)
    assert (skip is None and (not use_skip)) or (use_skip and skip is not None)

    B = z1.shape[0]
    Bp = ((B + 7) // 8) * 8            # pad batch to a full sublane tile
    z1p = jnp.pad(z1, ((0, Bp - B), (0, 0)))
    z2p = jnp.pad(z2, ((0, Bp - B), (0, 0)))

    inputs = [z1p, z2p]
    if use_skip:
        s1e, s1o = _prep_skip_pairs(skip[0], Bp)
        s2e, s2o = _prep_skip_pairs(skip[1], Bp)
        inputs += [s1e, s1o, s2e, s2o]
    if mixing == "concat":
        inputs += [packed["M0a"], packed["M0b"]]
    else:
        inputs += [packed["M0"]]
    inputs += [packed["b0"], packed["A1h"]]
    if use_skip:
        inputs += [packed["B1se"], packed["B1so"]]
    inputs += [packed["b1"], packed["A2h"]]
    if use_skip:
        inputs += [packed["B2se"], packed["B2so"]]
    inputs += [packed["b2"]]

    N1 = packed["A1h"].shape[2]        # C2 * 8
    N2 = packed["A2h"].shape[2]        # NY * 16
    NY = N2 // 16
    K1 = packed["A1h"].shape[1]
    K2 = packed["A2h"].shape[1]
    r1, r2 = 4 * Bp, 8 * Bp

    # advisory cost hint for XLA's scheduler around the single custom call
    flops = 2 * (4 * Bp * z1p.shape[1] * packed["b0"].shape[1]
                 * (2 if mixing == "concat" else 1)
                 + 4 * r1 * K1 * N1 + 4 * r2 * K2 * N2)
    if use_skip:
        flops += 2 * (2 * r1 * packed["B1se"].shape[0] * N1
                      + 2 * r2 * packed["B2se"].shape[0] * N2)
    transcendentals = 2 * r2 * N2 if last_activation in ("sigmoid", "tanh", "elu") else 0
    bytes_accessed = (sum(int(np.prod(x.shape)) * x.dtype.itemsize for x in inputs)
                      + 16 * Bp * N2 * 4)

    kernel = _build_decoder_kernel(mixing=mixing, use_skip=use_skip,
                                   last_activation=last_activation, Bp=Bp)
    vmem = pl.BlockSpec(memory_space=pltpu.MemorySpace.VMEM)
    o = pl.pallas_call(
        kernel,
        out_shape=jax.ShapeDtypeStruct((16 * Bp, N2), jnp.float32),
        in_specs=[vmem] * len(inputs),
        out_specs=vmem,
        cost_estimate=pl.CostEstimate(flops=flops,
                                      transcendentals=transcendentals,
                                      bytes_accessed=bytes_accessed),
    )(*inputs)

    # rows: oh*Bp + b ; cols: co*16 + ow  ->  (B, NY, 16, 16)
    out = o.reshape(16, Bp, NY, 16).transpose(1, 2, 0, 3)[:B]
    return out


# ----------------------------------------------------------------------------
# Pure numpy reference (dense ConvT-as-matrix, f32) for correctness checking.
# ----------------------------------------------------------------------------
def _dense_convt_matrix(w, b, H, W, stride, padding):
    w = np.asarray(w, np.float32)
    Cin, Cout, KH, KW = w.shape
    OH = (H - 1) * stride - 2 * padding + KH
    OW = (W - 1) * stride - 2 * padding + KW
    M = np.zeros((Cin * H * W, Cout * OH * OW), np.float32)
    ci = np.arange(Cin)[:, None]
    co = np.arange(Cout)[None, :]
    for ih in range(H):
        for iw in range(W):
            for kh in range(KH):
                for kw in range(KW):
                    oh = ih * stride - padding + kh
                    ow = iw * stride - padding + kw
                    if 0 <= oh < OH and 0 <= ow < OW:
                        M[ci * H * W + ih * W + iw,
                          co * OH * OW + oh * OW + ow] += w[:, :, kh, kw]
    bflat = np.repeat(np.asarray(b, np.float32), OH * OW)[None, :]
    return M, bflat, (Cout, OH, OW)


def _reference_forward(z1, z2, skips, raw, mixing, last_activation):
    def act(y, a):
        if a == "leaky_relu":
            return np.where(y >= 0, y, LEAKY_SLOPE * y)
        if a == "sigmoid":
            return 1.0 / (1.0 + np.exp(-y))
        if a == "tanh":
            return np.tanh(y)
        if a == "relu":
            return np.maximum(y, 0.0)
        if a == "elu":
            return np.where(y >= 0, y, np.exp(np.minimum(y, 0.0)) - 1.0)
        return y

    B = z1.shape[0]
    z = np.concatenate([z1, z2], 1) if mixing == "concat" else z1 * z2
    M0, b0f, _ = _dense_convt_matrix(raw["w0"], raw["b0"], 1, 1, 1, 0)
    h = act(z @ M0 + b0f, "leaky_relu")
    x = np.concatenate([h, skips[0].reshape(B, -1)], 1) if skips else h
    M1, b1f, _ = _dense_convt_matrix(raw["w1"], raw["b1"], 4, 4, 2, 1)
    h = act(x @ M1 + b1f, "leaky_relu")
    x = np.concatenate([h, skips[1].reshape(B, -1)], 1) if skips else h
    M2, b2f, shp = _dense_convt_matrix(raw["w2"], raw["b2"], 8, 8, 2, 1)
    y = act(x @ M2 + b2f, last_activation)
    return y.reshape(B, *shp)


# ----------------------------------------------------------------------------
if __name__ == "__main__":
    B, NZ, C1, C2, NY = 2, 16, 16, 8, 2
    SKIP0_C, SKIP1_C = 16, 8

    key = jax.random.PRNGKey(0)
    ks = jax.random.split(key, 10)

    z1 = jax.random.normal(ks[0], (B, NZ), jnp.float32)
    z2 = jax.random.normal(ks[1], (B, NZ), jnp.float32)
    skip0 = jax.random.normal(ks[2], (B, SKIP0_C, 4, 4), jnp.float32)
    skip1 = jax.random.normal(ks[3], (B, SKIP1_C, 8, 8), jnp.float32)

    # PyTorch ConvTranspose2d weight layout: (Cin, Cout, KH, KW)
    w0 = 0.1 * jax.random.normal(ks[4], (NZ, C1, 4, 4), jnp.float32)
    b0 = 0.1 * jax.random.normal(ks[5], (C1,), jnp.float32)
    w1 = 0.1 * jax.random.normal(ks[6], (C1 + SKIP0_C, C2, 4, 4), jnp.float32)
    b1 = 0.1 * jax.random.normal(ks[7], (C2,), jnp.float32)
    w2 = 0.1 * jax.random.normal(ks[8], (C2 + SKIP1_C, NY, 4, 4), jnp.float32)
    b2 = 0.1 * jax.random.normal(ks[9], (NY,), jnp.float32)

    packed = pack_decoder_params(np.asarray(w0), np.asarray(b0),
                                 np.asarray(w1), np.asarray(b1),
                                 np.asarray(w2), np.asarray(b2),
                                 mixing="mul", use_skip=True)

    fwd = jax.jit(functools.partial(base_decoder_forward, use_skip=True,
                                    mixing="mul", last_activation="sigmoid"))
    out = jax.block_until_ready(fwd(z1, z2, [skip0, skip1], packed))

    assert out.shape == (B, NY, 16, 16), out.shape
    assert bool(jnp.all(jnp.isfinite(out)))
    assert bool(jnp.all((out >= 0.0) & (out <= 1.0)))  # exact sigmoid range

    # correctness vs. the trusted dense f32 reference (bf16 matmul tolerance)
    ref = _reference_forward(np.asarray(z1), np.asarray(z2),
                             [np.asarray(skip0), np.asarray(skip1)],
                             dict(w0=np.asarray(w0), b0=np.asarray(b0),
                                  w1=np.asarray(w1), b1=np.asarray(b1),
                                  w2=np.asarray(w2), b2=np.asarray(b2)),
                             "mul", "sigmoid")
    np.testing.assert_allclose(np.asarray(out), ref, atol=5e-2, rtol=5e-2)

    print("KERNEL_OK")
</pallas_src>

<mosaic_0001>
module attributes {stable_mosaic.version = 11 : i64} {
  func.func @kernel(%arg0: memref<8x16xf32, #tpu.memory_space<vmem>>, %arg1: memref<8x16xf32, #tpu.memory_space<vmem>>, %arg2: memref<32x128xbf16, #tpu.memory_space<vmem>>, %arg3: memref<32x128xbf16, #tpu.memory_space<vmem>>, %arg4: memref<64x128xbf16, #tpu.memory_space<vmem>>, %arg5: memref<64x128xbf16, #tpu.memory_space<vmem>>, %arg6: memref<4x16x64xbf16, #tpu.memory_space<vmem>>, %arg7: memref<1x64xf32, #tpu.memory_space<vmem>>, %arg8: memref<4x64x64xbf16, #tpu.memory_space<vmem>>, %arg9: memref<128x64xbf16, #tpu.memory_space<vmem>>, %arg10: memref<128x64xbf16, #tpu.memory_space<vmem>>, %arg11: memref<1x64xf32, #tpu.memory_space<vmem>>, %arg12: memref<4x64x32xbf16, #tpu.memory_space<vmem>>, %arg13: memref<128x32xbf16, #tpu.memory_space<vmem>>, %arg14: memref<128x32xbf16, #tpu.memory_space<vmem>>, %arg15: memref<1x32xf32, #tpu.memory_space<vmem>>, %arg16: memref<128x32xf32, #tpu.memory_space<vmem>>) attributes {dimension_semantics = [], scalar_prefetch = 0 : i64, scratch_operands = 0 : i64, tpu.core_type = #tpu.core_type<tc>} {
    %c0 = arith.constant 0 : index
    %c0_0 = arith.constant 0 : index
    %0 = vector.load %arg0[%c0, %c0_0] : memref<8x16xf32, #tpu.memory_space<vmem>>, vector<8x16xf32>
    %c0_1 = arith.constant 0 : index
    %c0_2 = arith.constant 0 : index
    %1 = vector.load %arg1[%c0_1, %c0_2] : memref<8x16xf32, #tpu.memory_space<vmem>>, vector<8x16xf32>
    %2 = arith.mulf %0, %1 : vector<8x16xf32>
    %3 = arith.truncf %2 : vector<8x16xf32> to vector<8x16xbf16>
    %c0_3 = arith.constant 0 : index
    %c0_4 = arith.constant 0 : index
    %c0_5 = arith.constant 0 : index
    %4 = vector.load %arg6[%c0_3, %c0_4, %c0_5] : memref<4x16x64xbf16, #tpu.memory_space<vmem>>, vector<1x16x64xbf16>
    %5 = vector.shape_cast %4 : vector<1x16x64xbf16> to vector<16x64xbf16>
    %cst = arith.constant dense<0.000000e+00> : vector<8x64xf32>
    %6 = tpu.matmul %3, %5, %cst {dimension_numbers = #tpu.dot_dimension_numbers<[1], [0], [0], [1], [0, 0, 1, 1], [], []>} : vector<8x16xbf16>, vector<16x64xbf16>, vector<8x64xf32> -> vector<8x64xf32>
    %c1 = arith.constant 1 : index
    %c0_6 = arith.constant 0 : index
    %c0_7 = arith.constant 0 : index
    %7 = vector.load %arg6[%c1, %c0_6, %c0_7] : memref<4x16x64xbf16, #tpu.memory_space<vmem>>, vector<1x16x64xbf16>
    %8 = vector.shape_cast %7 : vector<1x16x64xbf16> to vector<16x64xbf16>
    %cst_8 = arith.constant dense<0.000000e+00> : vector<8x64xf32>
    %9 = tpu.matmul %3, %8, %cst_8 {dimension_numbers = #tpu.dot_dimension_numbers<[1], [0], [0], [1], [0, 0, 1, 1], [], []>} : vector<8x16xbf16>, vector<16x64xbf16>, vector<8x64xf32> -> vector<8x64xf32>
    %c2 = arith.constant 2 : index
    %c0_9 = arith.constant 0 : index
    %c0_10 = arith.constant 0 : index
    %10 = vector.load %arg6[%c2, %c0_9, %c0_10] : memref<4x16x64xbf16, #tpu.memory_space<vmem>>, vector<1x16x64xbf16>
    %11 = vector.shape_cast %10 : vector<1x16x64xbf16> to vector<16x64xbf16>
    %cst_11 = arith.constant dense<0.000000e+00> : vector<8x64xf32>
    %12 = tpu.matmul %3, %11, %cst_11 {dimension_numbers = #tpu.dot_dimension_numbers<[1], [0], [0], [1], [0, 0, 1, 1], [], []>} : vector<8x16xbf16>, vector<16x64xbf16>, vector<8x64xf32> -> vector<8x64xf32>
    %c3 = arith.constant 3 : index
    %c0_12 = arith.constant 0 : index
    %c0_13 = arith.constant 0 : index
    %13 = vector.load %arg6[%c3, %c0_12, %c0_13] : memref<4x16x64xbf16, #tpu.memory_space<vmem>>, vector<1x16x64xbf16>
    %14 = vector.shape_cast %13 : vector<1x16x64xbf16> to vector<16x64xbf16>
    %cst_14 = arith.constant dense<0.000000e+00> : vector<8x64xf32>
    %15 = tpu.matmul %3, %14, %cst_14 {dimension_numbers = #tpu.dot_dimension_numbers<[1], [0], [0], [1], [0, 0, 1, 1], [], []>} : vector<8x16xbf16>, vector<16x64xbf16>, vector<8x64xf32> -> vector<8x64xf32>
    %16 = tpu.concatenate %6, %9, %12, %15 in 0 : vector<8x64xf32>, vector<8x64xf32>, vector<8x64xf32>, vector<8x64xf32> -> vector<32x64xf32>
    %c0_15 = arith.constant 0 : index
    %c0_16 = arith.constant 0 : index
    %17 = vector.load %arg7[%c0_15, %c0_16] : memref<1x64xf32, #tpu.memory_space<vmem>>, vector<1x64xf32>
    %18 = vector.broadcast %17 : vector<1x64xf32> to vector<32x64xf32>
    %19 = arith.addf %16, %18 : vector<32x64xf32>
    %cst_17 = arith.constant 0.000000e+00 : f32
    %20 = vector.broadcast %cst_17 : f32 to vector<32x64xf32>
    %21 = arith.cmpf oge, %19, %20 : vector<32x64xf32>
    %cst_18 = arith.constant 2.000000e-01 : f32
    %22 = vector.broadcast %cst_18 : f32 to vector<32x64xf32>
    %23 = arith.mulf %22, %19 : vector<32x64xf32>
    %24 = arith.select %21, %19, %23 : vector<32x64xi1>, vector<32x64xf32>
    %c0_19 = arith.constant 0 : index
    %c0_20 = arith.constant 0 : index
    %25 = vector.load %arg2[%c0_19, %c0_20] : memref<32x128xbf16, #tpu.memory_space<vmem>>, vector<32x128xbf16>
    %c0_21 = arith.constant 0 : index
    %c0_22 = arith.constant 0 : index
    %26 = vector.load %arg3[%c0_21, %c0_22] : memref<32x128xbf16, #tpu.memory_space<vmem>>, vector<32x128xbf16>
    %cst_23 = arith.constant 0.000000e+00 : f32
    %27 = vector.broadcast %cst_23 : f32 to vector<8x64xf32>
    %28 = vector.extract_strided_slice %24 {offsets = [0, 0], sizes = [24, 64], strides = [1, 1]} : vector<32x64xf32> to vector<24x64xf32>
    %29 = tpu.concatenate %27, %28 in 0 : vector<8x64xf32>, vector<24x64xf32> -> vector<32x64xf32>
    %30 = arith.truncf %29 : vector<32x64xf32> to vector<32x64xbf16>
    %cst_24 = arith.constant 0.000000e+00 : f32
    %31 = vector.broadcast %cst_24 : f32 to vector<8x64xf32>
    %32 = vector.extract_strided_slice %24 {offsets = [8, 0], sizes = [24, 64], strides = [1, 1]} : vector<32x64xf32> to vector<24x64xf32>
    %33 = tpu.concatenate %32, %31 in 0 : vector<24x64xf32>, vector<8x64xf32> -> vector<32x64xf32>
    %34 = arith.truncf %33 : vector<32x64xf32> to vector<32x64xbf16>
    %35 = arith.truncf %24 : vector<32x64xf32> to vector<32x64xbf16>
    %c3_25 = arith.constant 3 : index
    %c0_26 = arith.constant 0 : index
    %c0_27 = arith.constant 0 : index
    %36 = vector.load %arg8[%c3_25, %c0_26, %c0_27] : memref<4x64x64xbf16, #tpu.memory_space<vmem>>, vector<1x64x64xbf16>
    %37 = vector.shape_cast %36 : vector<1x64x64xbf16> to vector<64x64xbf16>
    %cst_28 = arith.constant dense<0.000000e+00> : vector<32x64xf32>
    %38 = tpu.matmul %30, %37, %cst_28 {dimension_numbers = #tpu.dot_dimension_numbers<[1], [0], [0], [1], [0, 0, 1, 1], [], []>} : vector<32x64xbf16>, vector<64x64xbf16>, vector<32x64xf32> -> vector<32x64xf32>
    %c1_29 = arith.constant 1 : index
    %c0_30 = arith.constant 0 : index
    %c0_31 = arith.constant 0 : index
    %39 = vector.load %arg8[%c1_29, %c0_30, %c0_31] : memref<4x64x64xbf16, #tpu.memory_space<vmem>>, vector<1x64x64xbf16>
    %40 = vector.shape_cast %39 : vector<1x64x64xbf16> to vector<64x64xbf16>
    %cst_32 = arith.constant dense<0.000000e+00> : vector<32x64xf32>
    %41 = tpu.matmul %35, %40, %cst_32 {dimension_numbers = #tpu.dot_dimension_numbers<[1], [0], [0], [1], [0, 0, 1, 1], [], []>} : vector<32x64xbf16>, vector<64x64xbf16>, vector<32x64xf32> -> vector<32x64xf32>
    %42 = arith.addf %38, %41 : vector<32x64xf32>
    %c0_33 = arith.constant 0 : index
    %c0_34 = arith.constant 0 : index
    %43 = vector.load %arg11[%c0_33, %c0_34] : memref<1x64xf32, #tpu.memory_space<vmem>>, vector<1x64xf32>
    %44 = vector.broadcast %43 : vector<1x64xf32> to vector<32x64xf32>
    %45 = arith.addf %42, %44 : vector<32x64xf32>
    %c2_35 = arith.constant 2 : index
    %c0_36 = arith.constant 0 : index
    %c0_37 = arith.constant 0 : index
    %46 = vector.load %arg8[%c2_35, %c0_36, %c0_37] : memref<4x64x64xbf16, #tpu.memory_space<vmem>>, vector<1x64x64xbf16>
    %47 = vector.shape_cast %46 : vector<1x64x64xbf16> to vector<64x64xbf16>
    %cst_38 = arith.constant dense<0.000000e+00> : vector<32x64xf32>
    %48 = tpu.matmul %35, %47, %cst_38 {dimension_numbers = #tpu.dot_dimension_numbers<[1], [0], [0], [1], [0, 0, 1, 1], [], []>} : vector<32x64xbf16>, vector<64x64xbf16>, vector<32x64xf32> -> vector<32x64xf32>
    %c0_39 = arith.constant 0 : index
    %c0_40 = arith.constant 0 : index
    %c0_41 = arith.constant 0 : index
    %49 = vector.load %arg8[%c0_39, %c0_40, %c0_41] : memref<4x64x64xbf16, #tpu.memory_space<vmem>>, vector<1x64x64xbf16>
    %50 = vector.shape_cast %49 : vector<1x64x64xbf16> to vector<64x64xbf16>
    %cst_42 = arith.constant dense<0.000000e+00> : vector<32x64xf32>
    %51 = tpu.matmul %34, %50, %cst_42 {dimension_numbers = #tpu.dot_dimension_numbers<[1], [0], [0], [1], [0, 0, 1, 1], [], []>} : vector<32x64xbf16>, vector<64x64xbf16>, vector<32x64xf32> -> vector<32x64xf32>
    %52 = arith.addf %48, %51 : vector<32x64xf32>
    %c0_43 = arith.constant 0 : index
    %c0_44 = arith.constant 0 : index
    %53 = vector.load %arg11[%c0_43, %c0_44] : memref<1x64xf32, #tpu.memory_space<vmem>>, vector<1x64xf32>
    %54 = vector.broadcast %53 : vector<1x64xf32> to vector<32x64xf32>
    %55 = arith.addf %52, %54 : vector<32x64xf32>
    %c0_45 = arith.constant 0 : index
    %c0_46 = arith.constant 0 : index
    %56 = vector.load %arg9[%c0_45, %c0_46] : memref<128x64xbf16, #tpu.memory_space<vmem>>, vector<128x64xbf16>
    %cst_47 = arith.constant dense<0.000000e+00> : vector<32x64xf32>
    %57 = tpu.matmul %25, %56, %cst_47 {dimension_numbers = #tpu.dot_dimension_numbers<[1], [0], [0], [1], [0, 0, 1, 1], [], []>} : vector<32x128xbf16>, vector<128x64xbf16>, vector<32x64xf32> -> vector<32x64xf32>
    %58 = arith.addf %45, %57 : vector<32x64xf32>
    %c0_48 = arith.constant 0 : index
    %c0_49 = arith.constant 0 : index
    %59 = vector.load %arg10[%c0_48, %c0_49] : memref<128x64xbf16, #tpu.memory_space<vmem>>, vector<128x64xbf16>
    %cst_50 = arith.constant dense<0.000000e+00> : vector<32x64xf32>
    %60 = tpu.matmul %26, %59, %cst_50 {dimension_numbers = #tpu.dot_dimension_numbers<[1], [0], [0], [1], [0, 0, 1, 1], [], []>} : vector<32x128xbf16>, vector<128x64xbf16>, vector<32x64xf32> -> vector<32x64xf32>
    %61 = arith.addf %55, %60 : vector<32x64xf32>
    %cst_51 = arith.constant 0.000000e+00 : f32
    %62 = vector.broadcast %cst_51 : f32 to vector<32x64xf32>
    %63 = arith.cmpf oge, %58, %62 : vector<32x64xf32>
    %cst_52 = arith.constant 2.000000e-01 : f32
    %64 = vector.broadcast %cst_52 : f32 to vector<32x64xf32>
    %65 = arith.mulf %64, %58 : vector<32x64xf32>
    %66 = arith.select %63, %58, %65 : vector<32x64xi1>, vector<32x64xf32>
    %cst_53 = arith.constant 0.000000e+00 : f32
    %67 = vector.broadcast %cst_53 : f32 to vector<32x64xf32>
    %68 = arith.cmpf oge, %61, %67 : vector<32x64xf32>
    %cst_54 = arith.constant 2.000000e-01 : f32
    %69 = vector.broadcast %cst_54 : f32 to vector<32x64xf32>
    %70 = arith.mulf %69, %61 : vector<32x64xf32>
    %71 = arith.select %68, %61, %70 : vector<32x64xi1>, vector<32x64xf32>
    %72 = vector.extract_strided_slice %66 {offsets = [0, 0], sizes = [8, 64], strides = [1, 1]} : vector<32x64xf32> to vector<8x64xf32>
    %73 = vector.extract_strided_slice %71 {offsets = [0, 0], sizes = [8, 64], strides = [1, 1]} : vector<32x64xf32> to vector<8x64xf32>
    %74 = vector.extract_strided_slice %66 {offsets = [8, 0], sizes = [8, 64], strides = [1, 1]} : vector<32x64xf32> to vector<8x64xf32>
    %75 = vector.extract_strided_slice %71 {offsets = [8, 0], sizes = [8, 64], strides = [1, 1]} : vector<32x64xf32> to vector<8x64xf32>
    %76 = vector.extract_strided_slice %66 {offsets = [16, 0], sizes = [8, 64], strides = [1, 1]} : vector<32x64xf32> to vector<8x64xf32>
    %77 = vector.extract_strided_slice %71 {offsets = [16, 0], sizes = [8, 64], strides = [1, 1]} : vector<32x64xf32> to vector<8x64xf32>
    %78 = vector.extract_strided_slice %66 {offsets = [24, 0], sizes = [8, 64], strides = [1, 1]} : vector<32x64xf32> to vector<8x64xf32>
    %79 = vector.extract_strided_slice %71 {offsets = [24, 0], sizes = [8, 64], strides = [1, 1]} : vector<32x64xf32> to vector<8x64xf32>
    %80 = tpu.concatenate %72, %73, %74, %75, %76, %77, %78, %79 in 0 : vector<8x64xf32>, vector<8x64xf32>, vector<8x64xf32>, vector<8x64xf32>, vector<8x64xf32>, vector<8x64xf32>, vector<8x64xf32>, vector<8x64xf32> -> vector<64x64xf32>
    %c0_55 = arith.constant 0 : index
    %c0_56 = arith.constant 0 : index
    %81 = vector.load %arg4[%c0_55, %c0_56] : memref<64x128xbf16, #tpu.memory_space<vmem>>, vector<64x128xbf16>
    %c0_57 = arith.constant 0 : index
    %c0_58 = arith.constant 0 : index
    %82 = vector.load %arg5[%c0_57, %c0_58] : memref<64x128xbf16, #tpu.memory_space<vmem>>, vector<64x128xbf16>
    %cst_59 = arith.constant 0.000000e+00 : f32
    %83 = vector.broadcast %cst_59 : f32 to vector<8x64xf32>
    %84 = vector.extract_strided_slice %80 {offsets = [0, 0], sizes = [56, 64], strides = [1, 1]} : vector<64x64xf32> to vector<56x64xf32>
    %85 = tpu.concatenate %83, %84 in 0 : vector<8x64xf32>, vector<56x64xf32> -> vector<64x64xf32>
    %86 = arith.truncf %85 : vector<64x64xf32> to vector<64x64xbf16>
    %cst_60 = arith.constant 0.000000e+00 : f32
    %87 = vector.broadcast %cst_60 : f32 to vector<8x64xf32>
    %88 = vector.extract_strided_slice %80 {offsets = [8, 0], sizes = [56, 64], strides = [1, 1]} : vector<64x64xf32> to vector<56x64xf32>
    %89 = tpu.concatenate %88, %87 in 0 : vector<56x64xf32>, vector<8x64xf32> -> vector<64x64xf32>
    %90 = arith.truncf %89 : vector<64x64xf32> to vector<64x64xbf16>
    %91 = arith.truncf %80 : vector<64x64xf32> to vector<64x64xbf16>
    %c3_61 = arith.constant 3 : index
    %c0_62 = arith.constant 0 : index
    %c0_63 = arith.constant 0 : index
    %92 = vector.load %arg12[%c3_61, %c0_62, %c0_63] : memref<4x64x32xbf16, #tpu.memory_space<vmem>>, vector<1x64x32xbf16>
    %93 = vector.shape_cast %92 : vector<1x64x32xbf16> to vector<64x32xbf16>
    %cst_64 = arith.constant dense<0.000000e+00> : vector<64x32xf32>
    %94 = tpu.matmul %86, %93, %cst_64 {dimension_numbers = #tpu.dot_dimension_numbers<[1], [0], [0], [1], [0, 0, 1, 1], [], []>} : vector<64x64xbf16>, vector<64x32xbf16>, vector<64x32xf32> -> vector<64x32xf32>
    %c1_65 = arith.constant 1 : index
    %c0_66 = arith.constant 0 : index
    %c0_67 = arith.constant 0 : index
    %95 = vector.load %arg12[%c1_65, %c0_66, %c0_67] : memref<4x64x32xbf16, #tpu.memory_space<vmem>>, vector<1x64x32xbf16>
    %96 = vector.shape_cast %95 : vector<1x64x32xbf16> to vector<64x32xbf16>
    %cst_68 = arith.constant dense<0.000000e+00> : vector<64x32xf32>
    %97 = tpu.matmul %91, %96, %cst_68 {dimension_numbers = #tpu.dot_dimension_numbers<[1], [0], [0], [1], [0, 0, 1, 1], [], []>} : vector<64x64xbf16>, vector<64x32xbf16>, vector<64x32xf32> -> vector<64x32xf32>
    %98 = arith.addf %94, %97 : vector<64x32xf32>
    %c0_69 = arith.constant 0 : index
    %c0_70 = arith.constant 0 : index
    %99 = vector.load %arg15[%c0_69, %c0_70] : memref<1x32xf32, #tpu.memory_space<vmem>>, vector<1x32xf32>
    %100 = vector.broadcast %99 : vector<1x32xf32> to vector<64x32xf32>
    %101 = arith.addf %98, %100 : vector<64x32xf32>
    %c2_71 = arith.constant 2 : index
    %c0_72 = arith.constant 0 : index
    %c0_73 = arith.constant 0 : index
    %102 = vector.load %arg12[%c2_71, %c0_72, %c0_73] : memref<4x64x32xbf16, #tpu.memory_space<vmem>>, vector<1x64x32xbf16>
    %103 = vector.shape_cast %102 : vector<1x64x32xbf16> to vector<64x32xbf16>
    %cst_74 = arith.constant dense<0.000000e+00> : vector<64x32xf32>
    %104 = tpu.matmul %91, %103, %cst_74 {dimension_numbers = #tpu.dot_dimension_numbers<[1], [0], [0], [1], [0, 0, 1, 1], [], []>} : vector<64x64xbf16>, vector<64x32xbf16>, vector<64x32xf32> -> vector<64x32xf32>
    %c0_75 = arith.constant 0 : index
    %c0_76 = arith.constant 0 : index
    %c0_77 = arith.constant 0 : index
    %105 = vector.load %arg12[%c0_75, %c0_76, %c0_77] : memref<4x64x32xbf16, #tpu.memory_space<vmem>>, vector<1x64x32xbf16>
    %106 = vector.shape_cast %105 : vector<1x64x32xbf16> to vector<64x32xbf16>
    %cst_78 = arith.constant dense<0.000000e+00> : vector<64x32xf32>
    %107 = tpu.matmul %90, %106, %cst_78 {dimension_numbers = #tpu.dot_dimension_numbers<[1], [0], [0], [1], [0, 0, 1, 1], [], []>} : vector<64x64xbf16>, vector<64x32xbf16>, vector<64x32xf32> -> vector<64x32xf32>
    %108 = arith.addf %104, %107 : vector<64x32xf32>
    %c0_79 = arith.constant 0 : index
    %c0_80 = arith.constant 0 : index
    %109 = vector.load %arg15[%c0_79, %c0_80] : memref<1x32xf32, #tpu.memory_space<vmem>>, vector<1x32xf32>
    %110 = vector.broadcast %109 : vector<1x32xf32> to vector<64x32xf32>
    %111 = arith.addf %108, %110 : vector<64x32xf32>
    %c0_81 = arith.constant 0 : index
    %c0_82 = arith.constant 0 : index
    %112 = vector.load %arg13[%c0_81, %c0_82] : memref<128x32xbf16, #tpu.memory_space<vmem>>, vector<128x32xbf16>
    %cst_83 = arith.constant dense<0.000000e+00> : vector<64x32xf32>
    %113 = tpu.matmul %81, %112, %cst_83 {dimension_numbers = #tpu.dot_dimension_numbers<[1], [0], [0], [1], [0, 0, 1, 1], [], []>} : vector<64x128xbf16>, vector<128x32xbf16>, vector<64x32xf32> -> vector<64x32xf32>
    %114 = arith.addf %101, %113 : vector<64x32xf32>
    %c0_84 = arith.constant 0 : index
    %c0_85 = arith.constant 0 : index
    %115 = vector.load %arg14[%c0_84, %c0_85] : memref<128x32xbf16, #tpu.memory_space<vmem>>, vector<128x32xbf16>
    %cst_86 = arith.constant dense<0.000000e+00> : vector<64x32xf32>
    %116 = tpu.matmul %82, %115, %cst_86 {dimension_numbers = #tpu.dot_dimension_numbers<[1], [0], [0], [1], [0, 0, 1, 1], [], []>} : vector<64x128xbf16>, vector<128x32xbf16>, vector<64x32xf32> -> vector<64x32xf32>
    %117 = arith.addf %111, %116 : vector<64x32xf32>
    %cst_87 = arith.constant 5.000000e-01 : f32
    %118 = vector.broadcast %cst_87 : f32 to vector<64x32xf32>
    %119 = arith.mulf %118, %114 : vector<64x32xf32>
    %120 = math.tanh %119 : vector<64x32xf32>
    %cst_88 = arith.constant 1.000000e+00 : f32
    %121 = vector.broadcast %cst_88 : f32 to vector<64x32xf32>
    %122 = arith.addf %120, %121 : vector<64x32xf32>
    %cst_89 = arith.constant 5.000000e-01 : f32
    %123 = vector.broadcast %cst_89 : f32 to vector<64x32xf32>
    %124 = arith.mulf %123, %122 : vector<64x32xf32>
    %cst_90 = arith.constant 5.000000e-01 : f32
    %125 = vector.broadcast %cst_90 : f32 to vector<64x32xf32>
    %126 = arith.mulf %125, %117 : vector<64x32xf32>
    %127 = math.tanh %126 : vector<64x32xf32>
    %cst_91 = arith.constant 1.000000e+00 : f32
    %128 = vector.broadcast %cst_91 : f32 to vector<64x32xf32>
    %129 = arith.addf %127, %128 : vector<64x32xf32>
    %cst_92 = arith.constant 5.000000e-01 : f32
    %130 = vector.broadcast %cst_92 : f32 to vector<64x32xf32>
    %131 = arith.mulf %130, %129 : vector<64x32xf32>
    %132 = vector.extract_strided_slice %124 {offsets = [0, 0], sizes = [8, 32], strides = [1, 1]} : vector<64x32xf32> to vector<8x32xf32>
    %133 = vector.extract_strided_slice %131 {offsets = [0, 0], sizes = [8, 32], strides = [1, 1]} : vector<64x32xf32> to vector<8x32xf32>
    %134 = vector.extract_strided_slice %124 {offsets = [8, 0], sizes = [8, 32], strides = [1, 1]} : vector<64x32xf32> to vector<8x32xf32>
    %135 = vector.extract_strided_slice %131 {offsets = [8, 0], sizes = [8, 32], strides = [1, 1]} : vector<64x32xf32> to vector<8x32xf32>
    %136 = vector.extract_strided_slice %124 {offsets = [16, 0], sizes = [8, 32], strides = [1, 1]} : vector<64x32xf32> to vector<8x32xf32>
    %137 = vector.extract_strided_slice %131 {offsets = [16, 0], sizes = [8, 32], strides = [1, 1]} : vector<64x32xf32> to vector<8x32xf32>
    %138 = vector.extract_strided_slice %124 {offsets = [24, 0], sizes = [8, 32], strides = [1, 1]} : vector<64x32xf32> to vector<8x32xf32>
    %139 = vector.extract_strided_slice %131 {offsets = [24, 0], sizes = [8, 32], strides = [1, 1]} : vector<64x32xf32> to vector<8x32xf32>
    %140 = vector.extract_strided_slice %124 {offsets = [32, 0], sizes = [8, 32], strides = [1, 1]} : vector<64x32xf32> to vector<8x32xf32>
    %141 = vector.extract_strided_slice %131 {offsets = [32, 0], sizes = [8, 32], strides = [1, 1]} : vector<64x32xf32> to vector<8x32xf32>
    %142 = vector.extract_strided_slice %124 {offsets = [40, 0], sizes = [8, 32], strides = [1, 1]} : vector<64x32xf32> to vector<8x32xf32>
    %143 = vector.extract_strided_slice %131 {offsets = [40, 0], sizes = [8, 32], strides = [1, 1]} : vector<64x32xf32> to vector<8x32xf32>
    %144 = vector.extract_strided_slice %124 {offsets = [48, 0], sizes = [8, 32], strides = [1, 1]} : vector<64x32xf32> to vector<8x32xf32>
    %145 = vector.extract_strided_slice %131 {offsets = [48, 0], sizes = [8, 32], strides = [1, 1]} : vector<64x32xf32> to vector<8x32xf32>
    %146 = vector.extract_strided_slice %124 {offsets = [56, 0], sizes = [8, 32], strides = [1, 1]} : vector<64x32xf32> to vector<8x32xf32>
    %147 = vector.extract_strided_slice %131 {offsets = [56, 0], sizes = [8, 32], strides = [1, 1]} : vector<64x32xf32> to vector<8x32xf32>
    %148 = tpu.concatenate %132, %133, %134, %135, %136, %137, %138, %139, %140, %141, %142, %143, %144, %145, %146, %147 in 0 : vector<8x32xf32>, vector<8x32xf32>, vector<8x32xf32>, vector<8x32xf32>, vector<8x32xf32>, vector<8x32xf32>, vector<8x32xf32>, vector<8x32xf32>, vector<8x32xf32>, vector<8x32xf32>, vector<8x32xf32>, vector<8x32xf32>, vector<8x32xf32>, vector<8x32xf32>, vector<8x32xf32>, vector<8x32xf32> -> vector<128x32xf32>
    %c0_93 = arith.constant 0 : index
    %c0_94 = arith.constant 0 : index
    %149 = vector.load %arg16[%c0_93, %c0_94] : memref<128x32xf32, #tpu.memory_space<vmem>>, vector<128x32xf32>
    tpu.vector_store %arg16[%c0_93, %c0_94], %148 {strides = array<i32>} : memref<128x32xf32, #tpu.memory_space<vmem>>, vector<128x32xf32>,
    return
  }
}

</mosaic_0001>

<bundles_post_ra>
// kernel: base_decoder_forward.1
= control target key start
LH: loop header
LB: loop body
LE: loop exit
PB: predicated region body
PF: predicated region fallthrough
CT: control target
= control target key end

     0   :  { %vm66_vm0 = vcmask 130048   ;;  %vm224_vm3 = vcmask 523264   ;;  %v1819_v49 = vmov 0.0   ;;  %vm1272_vm14 = vcmask 261120   ;;  %s2320_s6 = inlined_call_operand.vmem [shape: bf16[4,16,64], index: 6, kind: input, shape index: {}]   ;;  %s2321_s0 = inlined_call_operand.vmem [shape: f32[8,16], index: 0, kind: input, shape index: {}]   ;;  %s2322_s1 = inlined_call_operand.vmem [shape: f32[8,16], index: 1, kind: input, shape index: {}]   ;;  %s2323_s8 = inlined_call_operand.vmem [shape: bf16[4,64,64], index: 8, kind: input, shape index: {}]   ;;  %s2324_s7 = inlined_call_operand.vmem [shape: f32[1,64], index: 7, kind: input, shape index: {}]   ;;  %s2325_s9 = inlined_call_operand.vmem [shape: bf16[128,64], index: 9, kind: input, shape index: {}]   ;;  %s2326_s10 = inlined_call_operand.vmem [shape: bf16[128,64], index: 10, kind: input, shape index: {}]   ;;  %s2327_s11 = inlined_call_operand.vmem [shape: f32[1,64], index: 11, kind: input, shape index: {}]   ;;  %s2328_s2 = inlined_call_operand.vmem [shape: bf16[32,128], index: 2, kind: input, shape index: {}]   ;;  %s2329_s3 = inlined_call_operand.vmem [shape: bf16[32,128], index: 3, kind: input, shape index: {}]   ;;  %s2330_s12 = inlined_call_operand.vmem [shape: bf16[4,64,32], index: 12, kind: input, shape index: {}]   ;;  %s2331_s13 = inlined_call_operand.vmem [shape: bf16[128,32], index: 13, kind: input, shape index: {}]   ;;  %s2332_s14 = inlined_call_operand.vmem [shape: bf16[128,32], index: 14, kind: input, shape index: {}]   ;;  %s2333_s15 = inlined_call_operand.vmem [shape: f32[1,32], index: 15, kind: input, shape index: {}]   ;;  %s2334_s4 = inlined_call_operand.vmem [shape: bf16[64,128], index: 4, kind: input, shape index: {}]   ;;  %s2335_s5 = inlined_call_operand.vmem [shape: bf16[64,128], index: 5, kind: input, shape index: {}]   ;;  %s2336_s16 = inlined_call_operand.vmem [shape: f32[128,32], index: 16, kind: output, shape index: {}]  }
   0x1   :  { %2338 = sst [smem:[#allocation2_spill]] %s2320_s6  ;;  %v54_v4 = vld [vmem:[%s2321_s0] sm:$0xff]  ;;  %v1710_v7 = vld [vmem:[%s2323_s8 + $0x38] sm:$0xff]  ;;  %v1709_v11 = vld [vmem:[%s2323_s8 + $0x30] sm:$0xff] }
   0x2   :  { %s2339_s23 = sld [smem:[#allocation2_spill]]  ;;  %v55_v5 = vld [vmem:[%s2322_s1] sm:$0xff]  ;;  %v1706_v8 = vld [vmem:[%s2323_s8 + $0x78] sm:$0xff]  ;;  %v1705_v12 = vld [vmem:[%s2323_s8 + $0x70] sm:$0xff] }
   0x3   :  { %v56_v6 = vmul.f32 %v55_v5, %v54_v4  ;;  %v1714_v9 = vld [vmem:[%s2323_s8 + $0x58] sm:$0xff]  ;;  %v1713_v13 = vld [vmem:[%s2323_s8 + $0x50] sm:$0xff]  ;;  %v1708_v15 = vld [vmem:[%s2323_s8 + $0x28] sm:$0xff] }
   0x4   :  { %v1718_v14 = vld [vmem:[%s2323_s8 + $0x18] sm:$0xff]  ;;  %v1704_v16 = vld [vmem:[%s2323_s8 + $0x68] sm:$0xff]  ;;  %v1717_v18 = vld [vmem:[%s2323_s8 + $0x10] sm:$0xff] }
   0x5   :  { %v57_v10 = vpack.c.bf16 %v56_v6, %v56_v6  ;;  %v1712_v17 = vld [vmem:[%s2323_s8 + $0x48] sm:$0xff]  ;;  %v1707_v19 = vld [vmem:[%s2323_s8 + $0x20] sm:$0xff]  ;;  %v1726_v23 = vld [vmem:[%s2325_s9 + $0x38] sm:$0xff] }
   0x6   :  { %v1703_v20 = vld [vmem:[%s2323_s8 + $0x60] sm:$0xff]  ;;  %v1716_v22 = vld [vmem:[%s2323_s8 + $0x8] sm:$0xff]  ;;  %v1734_v24 = vld [vmem:[%s2326_s10 + $0x38] sm:$0xff] }
   0x7   :  { %v1711_v21 = vld [vmem:[%s2323_s8 + $0x40] sm:$0xff]  ;;  %v1725_v26 = vld [vmem:[%s2325_s9 + $0x30] sm:$0xff]  ;;  %v1724_v28 = vld [vmem:[%s2325_s9 + $0x28] sm:$0xff] }
   0x8   :  { %v1695_v0 = vld [vmem:[%s2339_s23] sm:$0xff]  ;;  %v1696_v1 = vld [vmem:[%s2339_s23 + $0x8] sm:$0xff]  ;;  %v1697_v2 = vld [vmem:[%s2339_s23 + $0x10] sm:$0xff] }
   0x9   :  { %v1698_v3 = vld [vmem:[%s2339_s23 + $0x18] sm:$0xff]  ;;  %77 = vmatpush.bf16.msra.mxu0 %v1695_v0  ;;  %99 = vmatpush.bf16.msra.mxu1 %v1696_v1  ;;  %v1715_v25 = vld [vmem:[%s2323_s8] sm:$0xff]  ;;  %v1733_v27 = vld [vmem:[%s2326_s10 + $0x30] sm:$0xff] }
   0xa   :  { %121 = vmatpush.bf16.msra.mxu2 %v1697_v2  ;;  %143 = vmatpush.bf16.msra.mxu3 %v1698_v3  ;;  %v1732_v29 = vld [vmem:[%s2326_s10 + $0x28] sm:$0xff]  ;;  %v1723_v30 = vld [vmem:[%s2325_s9 + $0x20] sm:$0xff]  ;;  %v1722_v32 = vld [vmem:[%s2325_s9 + $0x18] sm:$0xff] }
   0xb   :  { %v1731_v31 = vld [vmem:[%s2326_s10 + $0x20] sm:$0xff]  ;;  %v1730_v33 = vld [vmem:[%s2326_s10 + $0x18] sm:$0xff]  ;;  %v1721_v34 = vld [vmem:[%s2325_s9 + $0x10] sm:$0xff] }
   0xc   :  { %1297 = vmatmul.msk.bf16.vlgmr.msra.gmra.mxu0 %vm66_vm0, %v57_v10  ;;  %1304 = vmatmul.msk.bf16.vlgmr.msra.gmra.mxu1 %vm66_vm0, %v57_v10  ;;  %v1729_v35 = vld [vmem:[%s2326_s10 + $0x10] sm:$0xff]  ;;  %v1784_v36 = vld [vmem:[%s2324_s7] ss:$0 sm:$0xff]  ;;  %v1720_v37 = vld [vmem:[%s2325_s9 + $0x8] sm:$0xff] }
   0xd   :  { %235 = vmatpush.bf16.msrb.mxu0 %v1710_v7  ;;  %284 = vmatpush.bf16.msrb.mxu1 %v1706_v8  ;;  %v1728_v38 = vld [vmem:[%s2326_s10 + $0x8] sm:$0xff]  ;;  %v1719_v43 = vld [vmem:[%s2325_s9] sm:$0xff]  ;;  %v1750_v7 = vld [vmem:[%s2330_s12 + $0x38] sm:$0xff] }
   0xe   :  { %398 = vmatpush.bf16.msrb.mxu3 %v1714_v9  ;;  %1311 = vmatmul.msk.bf16.vlgmr.msra.gmra.mxu2 %vm66_vm0, %v57_v10  ;;  %v1727_v44 = vld [vmem:[%s2326_s10] sm:$0xff]  ;;  %v1700_v5 = vld [vmem:[%s2328_s2 + $0x8] sm:$0xff]  ;;  %v1746_v8 = vld [vmem:[%s2330_s12 + $0x78] sm:$0xff] }
   0xf   :  { %1318 = vmatmul.msk.bf16.vlgmr.msra.gmra.mxu3 %vm66_vm0, %v57_v10  ;;  %355 = vmatpush.bf16.msrb.mxu2 %v1718_v14  ;;  %v1699_v3 = vld [vmem:[%s2328_s2] sm:$0xff]  ;;  %v1702_v6 = vld [vmem:[%s2329_s3 + $0x8] sm:$0xff]  ;;  %v1749_v9 = vld [vmem:[%s2330_s12 + $0x30] sm:$0xff] }
  0x10   :  { %v1701_v4 = vld [vmem:[%s2329_s3] sm:$0xff]  ;;  %v1745_v10 = vld [vmem:[%s2330_s12 + $0x70] sm:$0xff]  ;;  %v1744_v14 = vld [vmem:[%s2330_s12 + $0x68] sm:$0xff] }
  0x11   :  { %236 = vmatpush.bf16.msrb.mxu0 %v1709_v11  ;;  %285 = vmatpush.bf16.msrb.mxu1 %v1705_v12 }
  0x12   :  { %399 = vmatpush.bf16.msrb.mxu3 %v1713_v13  ;;  %v1748_v13 = vld [vmem:[%s2330_s12 + $0x28] sm:$0xff] }
  0x13   :  { %356 = vmatpush.bf16.msrb.mxu2 %v1717_v18 }
  0x15   :  { %237 = vmatpush.bf16.msrb.mxu0 %v1708_v15  ;;  %286 = vmatpush.bf16.msrb.mxu1 %v1704_v16  ;;  %v1747_v15 = vld [vmem:[%s2330_s12 + $0x20] sm:$0xff] }
  0x16   :  { %400 = vmatpush.bf16.msrb.mxu3 %v1712_v17  ;;  %v1743_v16 = vld [vmem:[%s2330_s12 + $0x60] sm:$0xff] }
  0x17   :  { %357 = vmatpush.bf16.msrb.mxu2 %v1716_v22  ;;  %v1753_v22 = vld [vmem:[%s2330_s12 + $0x50] sm:$0xff] }
  0x19   :  { %238 = vmatpush.bf16.msrb.mxu0 %v1707_v19  ;;  %287 = vmatpush.bf16.msrb.mxu1 %v1703_v20  ;;  %v1758_v19 = vld [vmem:[%s2330_s12 + $0x18] sm:$0xff] }
  0x1a   :  { %401 = vmatpush.bf16.msrb.mxu3 %v1711_v21  ;;  %v1754_v20 = vld [vmem:[%s2330_s12 + $0x58] sm:$0xff]  ;;  %v1757_v21 = vld [vmem:[%s2330_s12 + $0x10] sm:$0xff] }
  0x1b   :  { %358 = vmatpush.bf16.msrb.mxu2 %v1715_v25  ;;  %v1756_v25 = vld [vmem:[%s2330_s12 + $0x8] sm:$0xff] }
  0x1d   :  { %493 = vmatpush.bf16.msra.mxu0 %v1726_v23  ;;  %592 = vmatpush.bf16.msra.mxu1 %v1734_v24 }
  0x1e   :  { %1779 = vmatpush.bf16.msra.mxu3 %v1746_v8 }
  0x1f   :  { %1775 = vmatpush.bf16.msra.mxu2 %v1750_v7 }
  0x21   :  { %494 = vmatpush.bf16.msra.mxu0 %v1725_v26  ;;  %593 = vmatpush.bf16.msra.mxu1 %v1733_v27  ;;  %v1752_v26 = vld [vmem:[%s2330_s12 + $0x48] sm:$0xff]  ;;  %v1766_v27 = vld [vmem:[%s2331_s13 + $0x38] sm:$0xff] }
  0x22   :  { %1780 = vmatpush.bf16.msra.mxu3 %v1745_v10 }
  0x23   :  { %1776 = vmatpush.bf16.msra.mxu2 %v1749_v9 }
  0x25   :  { %495 = vmatpush.bf16.msra.mxu0 %v1724_v28  ;;  %594 = vmatpush.bf16.msra.mxu1 %v1732_v29  ;;  %v1774_v28 = vld [vmem:[%s2332_s14 + $0x38] sm:$0xff]  ;;  %v1755_v29 = vld [vmem:[%s2330_s12] sm:$0xff] }
  0x26   :  { %1781 = vmatpush.bf16.msra.mxu3 %v1744_v14 }
  0x27   :  { %1777 = vmatpush.bf16.msra.mxu2 %v1748_v13 }
  0x29   :  { %496 = vmatpush.bf16.msra.mxu0 %v1723_v30  ;;  %595 = vmatpush.bf16.msra.mxu1 %v1731_v31  ;;  %v1751_v30 = vld [vmem:[%s2330_s12 + $0x40] sm:$0xff] }
  0x2a   :  { %1782 = vmatpush.bf16.msra.mxu3 %v1743_v16 }
  0x2b   :  { %1778 = vmatpush.bf16.msra.mxu2 %v1747_v15 }
  0x2d   :  { %497 = vmatpush.bf16.msra.mxu0 %v1722_v32  ;;  %596 = vmatpush.bf16.msra.mxu1 %v1730_v33  ;;  %v1765_v32 = vld [vmem:[%s2331_s13 + $0x30] sm:$0xff] }
  0x2e   :  { %v1773_v33 = vld [vmem:[%s2332_s14 + $0x30] sm:$0xff] }
  0x31   :  { %498 = vmatpush.bf16.msra.mxu0 %v1721_v34  ;;  %597 = vmatpush.bf16.msra.mxu1 %v1729_v35 }
  0x35   :  { %499 = vmatpush.bf16.msra.mxu0 %v1720_v37  ;;  %598 = vmatpush.bf16.msra.mxu1 %v1728_v38 }
  0x39   :  { %500 = vmatpush.bf16.msra.mxu0 %v1719_v43  ;;  %599 = vmatpush.bf16.msra.mxu1 %v1727_v44 }
  0x89   :  { %v79_v39 = vpop.f32.mrf.mxu0  ;;  %v101_v40 = vpop.f32.mrf.mxu1 }
  0x8a   :  { %v153_v41 = vadd.f32 %v1784_v36, %v79_v39  ;;  %v154_v42 = vadd.f32 %v1784_v36, %v101_v40  ;;  %v2114_v39 = vld [vmem:[%s2327_s11] ss:$0 sm:$0xff]  ;;  %v1764_v40 = vld [vmem:[%s2331_s13 + $0x28] sm:$0xff] }
  0x8c   :  { %vm157_vm1 = vcmp.ge.f32.partialorder %v153_v41, 0.0  ;;  %v161_v45 = vmul.f32 0.2, %v153_v41  ;;  %vm158_vm2 = vcmp.ge.f32.partialorder %v154_v42, 0.0  ;;  %v162_v46 = vmul.f32 0.2, %v154_v42 }
  0x8e   :  { %v165_v47 = vsel %vm157_vm1, %v153_v41, %v161_v45  ;;  %v166_v48 = vsel %vm158_vm2, %v154_v42, %v162_v46  ;;  %v1772_v41 = vld [vmem:[%s2332_s14 + $0x28] sm:$0xff] }
  0x8f   :  { %v177_v50 = vpack.c.bf16 %v165_v47, %v1819_v49  ;;  %v180_v51 = vpack.c.bf16 %v166_v48, %v165_v47  ;;  %v1763_v47 = vld [vmem:[%s2331_s13 + $0x20] sm:$0xff] }
  0x91   :  { %v123_v52 = vpop.f32.mrf.mxu2  ;;  %v81_v55 = vpop.f32.mrf.mxu0  ;;  %1351 = vmatmul.msk.bf16.vlgmr.msrb.gmra.mxu0 %vm224_vm3, %v180_v51  ;;  %1369 = vmatmul.msk.bf16.vlgmr.msrb.gmra.mxu1 %vm224_vm3, %v177_v50 }
  0x92   :  { %v145_v53 = vpop.f32.mrf.mxu3  ;;  %v155_v54 = vadd.f32 %v1784_v36, %v123_v52  ;;  %v103_v56 = vpop.f32.mrf.mxu1  ;;  %1413 = vmatmul.msk.bf16.vlgmr.msrb.gmra.mxu3 %vm224_vm3, %v180_v51  ;;  %722 = vmatpush.bf16.msrb.mxu0 %v1750_v7 }
  0x93   :  { %v156_v58 = vadd.f32 %v1784_v36, %v145_v53  ;;  %787 = vmatpush.bf16.msrb.mxu1 %v1746_v8  ;;  %1171 = vmatpush.bf16.msrb.mxu3 %v1774_v28 }
  0x94   :  { %vm159_vm4 = vcmp.ge.f32.partialorder %v155_v54, 0.0  ;;  %v163_v57 = vmul.f32 0.2, %v155_v54 }
  0x95   :  { %v164_v61 = vmul.f32 0.2, %v156_v58  ;;  %vm160_vm5 = vcmp.ge.f32.partialorder %v156_v58, 0.0 }
  0x96   :  { %v167_v59 = vsel %vm159_vm4, %v155_v54, %v163_v57  ;;  %723 = vmatpush.bf16.msrb.mxu0 %v1749_v9 }
  0x97   :  { %v178_v60 = vpack.c.bf16 %v167_v59, %v166_v48  ;;  %v168_v0 = vsel %vm160_vm5, %v156_v58, %v164_v61  ;;  %788 = vmatpush.bf16.msrb.mxu1 %v1745_v10  ;;  %1172 = vmatpush.bf16.msrb.mxu3 %v1773_v33  ;;  %v1771_v48 = vld [vmem:[%s2332_s14 + $0x20] sm:$0xff] }
  0x98   :  { %v181_v1 = vpack.c.bf16 %v168_v0, %v167_v59  ;;  %v179_v2 = vpack.c.bf16 0.0, %v168_v0 }
  0x99   :  { %1395 = vmatmul.msk.bf16.vlgmr.msrb.gmra.mxu2 %vm224_vm3, %v178_v60  ;;  %v125_v62 = vpop.f32.mrf.mxu2 }
  0x9a   :  { %v147_v63 = vpop.f32.mrf.mxu3  ;;  %724 = vmatpush.bf16.msrb.mxu0 %v1748_v13  ;;  %1046 = vmatpush.bf16.msrb.mxu2 %v1766_v27  ;;  %v1767_v27 = vld [vmem:[%s2332_s14] sm:$0xff] }
  0x9b   :  { %789 = vmatpush.bf16.msrb.mxu1 %v1744_v14  ;;  %1173 = vmatpush.bf16.msrb.mxu3 %v1772_v41 }
  0x9e   :  { %725 = vmatpush.bf16.msrb.mxu0 %v1747_v15  ;;  %1047 = vmatpush.bf16.msrb.mxu2 %v1765_v32 }
  0x9f   :  { %790 = vmatpush.bf16.msrb.mxu1 %v1743_v16  ;;  %1174 = vmatpush.bf16.msrb.mxu3 %v1771_v48 }
  0xa1   :  { %1352 = vmatmul.msk.bf16.gmra.mxu0 %vm224_vm3, %v181_v1  ;;  %1370 = vmatmul.msk.bf16.gmra.mxu1 %vm224_vm3, %v178_v60 }
  0xa2   :  { %1414 = vmatmul.msk.bf16.gmra.mxu3 %vm224_vm3, %v181_v1  ;;  %1048 = vmatpush.bf16.msrb.mxu2 %v1764_v40  ;;  %v1762_v1 = vld [vmem:[%s2331_s13 + $0x18] sm:$0xff] }
  0xa6   :  { %1049 = vmatpush.bf16.msrb.mxu2 %v1763_v47 }
  0xa9   :  { %1396 = vmatmul.msk.bf16.gmra.mxu2 %vm224_vm3, %v179_v2  ;;  %v1770_v2 = vld [vmem:[%s2332_s14 + $0x18] sm:$0xff] }
  0xaa   :  { %1050 = vmatpush.bf16.msrb.mxu2 %v1762_v1  ;;  %1175 = vmatpush.bf16.msrb.mxu3 %v1770_v2 }
  0xb1   :  { %501 = vmatmul.bf16.vlgmr.msra.gmra.mxu0 %v1699_v3  ;;  %600 = vmatmul.bf16.vlgmr.msra.gmra.mxu1 %v1701_v4 }
  0xb2   :  { %872 = vmatpush.bf16.msra.mxu0 %v1758_v19  ;;  %925 = vmatpush.bf16.msra.mxu1 %v1754_v20  ;;  %v1768_v19 = vld [vmem:[%s2332_s14 + $0x8] sm:$0xff] }
  0xb6   :  { %873 = vmatpush.bf16.msra.mxu0 %v1757_v21  ;;  %926 = vmatpush.bf16.msra.mxu1 %v1753_v22 }
  0xba   :  { %874 = vmatpush.bf16.msra.mxu0 %v1756_v25  ;;  %927 = vmatpush.bf16.msra.mxu1 %v1752_v26  ;;  %v1759_v26 = vld [vmem:[%s2331_s13] sm:$0xff] }
  0xbe   :  { %875 = vmatpush.bf16.msra.mxu0 %v1755_v29  ;;  %928 = vmatpush.bf16.msra.mxu1 %v1751_v30 }
  0xc1   :  { %506 = vmatmul.bf16.gmra.mxu0 %v1700_v5  ;;  %605 = vmatmul.bf16.gmra.mxu1 %v1702_v6  ;;  %v1761_v5 = vld [vmem:[%s2331_s13 + $0x10] sm:$0xff] }
  0xc2   :  { %v1769_v6 = vld [vmem:[%s2332_s14 + $0x10] sm:$0xff]  ;;  %1051 = vmatpush.bf16.msrb.mxu2 %v1761_v5 }
  0xc3   :  { %1176 = vmatpush.bf16.msrb.mxu3 %v1769_v6 }
  0xc7   :  { %1177 = vmatpush.bf16.msrb.mxu3 %v1768_v19 }
  0xcb   :  { %1178 = vmatpush.bf16.msrb.mxu3 %v1767_v27 }
 0x10e   :  { %v240_v11 = vpop.f32.mrf.mxu0  ;;  %v289_v12 = vpop.f32.mrf.mxu1 }
 0x10f   :  { %v290_v37 = vadd.f32 %v289_v12, %v240_v11 }
 0x111   :  { %v303_v43 = vadd.f32 %v2114_v39, %v290_v37 }
 0x115   :  { %v403_v34 = vpop.f32.mrf.mxu3 }
 0x116   :  { %v242_v17 = vpop.f32.mrf.mxu0  ;;  %v291_v18 = vpop.f32.mrf.mxu1 }
 0x117   :  { %v292_v53 = vadd.f32 %v291_v18, %v242_v17  ;;  %v1760_v18 = vld [vmem:[%s2331_s13 + $0x8] sm:$0xff] }
 0x118   :  { %1052 = vmatpush.bf16.msrb.mxu2 %v1760_v18 }
 0x119   :  { %v304_v61 = vadd.f32 %v2114_v39, %v292_v53  ;;  %v1740_v53 = vld [vmem:[%s2335_s5 + $0x8] sm:$0xff] }
 0x11c   :  { %v360_v31 = vpop.f32.mrf.mxu2  ;;  %1053 = vmatpush.bf16.msrb.mxu2 %v1759_v26 }
 0x11d   :  { %v404_v38 = vadd.f32 %v403_v34, %v360_v31  ;;  %v405_v50 = vpop.f32.mrf.mxu3 }
 0x11e   :  { %v2079_v23 = vpop.f32.mrf.mxu0  ;;  %v2081_v24 = vpop.f32.mrf.mxu1 }
 0x11f   :  { %v413_v44 = vadd.f32 %v2114_v39, %v404_v38  ;;  %v295_v10 = vadd.f32 %v2081_v24, %v2079_v23 }
 0x121   :  { %v305_v20 = vadd.f32 %v2114_v39, %v295_v10 }
 0x124   :  { %v362_v42 = vpop.f32.mrf.mxu2 }
 0x125   :  { %v406_v54 = vadd.f32 %v405_v50, %v362_v42  ;;  %v408_v9 = vpop.f32.mrf.mxu3  ;;  %v1739_v50 = vld [vmem:[%s2335_s5] sm:$0xff] }
 0x126   :  { %v2107_v35 = vpop.f32.mrf.mxu0  ;;  %v2109_v36 = vpop.f32.mrf.mxu1 }
 0x127   :  { %v414_v62 = vadd.f32 %v2114_v39, %v406_v54  ;;  %v297_v32 = vadd.f32 %v2109_v36, %v2107_v35  ;;  %v1737_v54 = vld [vmem:[%s2334_s4 + $0x10] sm:$0xff] }
 0x129   :  { %v306_v41 = vadd.f32 %v2114_v39, %v297_v32 }
 0x12c   :  { %v365_v4 = vpop.f32.mrf.mxu2 }
 0x12d   :  { %v409_v11 = vadd.f32 %v408_v9, %v365_v4  ;;  %v410_v31 = vpop.f32.mrf.mxu3 }
 0x12e   :  { %v502_v45 = vpop.f32.mrf.mxu0  ;;  %v601_v46 = vpop.f32.mrf.mxu1 }
 0x12f   :  { %v512_v51 = vadd.f32 %v502_v45, %v303_v43  ;;  %v611_v52 = vadd.f32 %v601_v46, %v413_v44  ;;  %v415_v21 = vadd.f32 %v2114_v39, %v409_v11 }
 0x131   :  { %vm615_vm6 = vcmp.ge.f32.partialorder %v512_v51, 0.0  ;;  %v619_v55 = vmul.f32 0.2, %v512_v51  ;;  %vm627_vm7 = vcmp.ge.f32.partialorder %v611_v52, 0.0  ;;  %v631_v56 = vmul.f32 0.2, %v611_v52 }
 0x133   :  { %v623_v57 = vsel %vm615_vm6, %v512_v51, %v619_v55  ;;  %v635_v58 = vsel %vm627_vm7, %v611_v52, %v631_v56  ;;  %v1736_v52 = vld [vmem:[%s2334_s4 + $0x8] sm:$0xff]  ;;  %v1741_v55 = vld [vmem:[%s2335_s5 + $0x10] sm:$0xff]  ;;  %v1738_v56 = vld [vmem:[%s2334_s4 + $0x18] sm:$0xff] }
 0x134   :  { %v655_v59 = vpack.c.bf16 %v623_v57, %v1819_v49  ;;  %v660_v60 = vpack.c.bf16 %v635_v58, %v623_v57  ;;  %v367_v28 = vpop.f32.mrf.mxu2  ;;  %v1742_v57 = vld [vmem:[%s2335_s5 + $0x18] sm:$0xff] }
 0x135   :  { %v411_v33 = vadd.f32 %v410_v31, %v367_v28 }
 0x136   :  { %v504_v63 = vpop.f32.mrf.mxu0  ;;  %v603_v0 = vpop.f32.mrf.mxu1  ;;  %1527 = vmatmul.msk.bf16.vlgmr.msrb.gmra.mxu0 %vm224_vm3, %v660_v60  ;;  %1547 = vmatmul.msk.bf16.vlgmr.msrb.gmra.mxu1 %vm224_vm3, %v655_v59 }
 0x137   :  { %v513_v49 = vadd.f32 %v504_v63, %v304_v61  ;;  %v612_v3 = vadd.f32 %v603_v0, %v414_v62  ;;  %v416_v42 = vadd.f32 %v2114_v39, %v411_v33  ;;  %v1735_v39 = vld [vmem:[%s2334_s4] sm:$0xff] }
 0x139   :  { %vm616_vm8 = vcmp.ge.f32.partialorder %v513_v49, 0.0  ;;  %v620_v7 = vmul.f32 0.2, %v513_v49  ;;  %vm628_vm9 = vcmp.ge.f32.partialorder %v612_v3, 0.0  ;;  %v632_v8 = vmul.f32 0.2, %v612_v3 }
 0x13b   :  { %v624_v12 = vsel %vm616_vm8, %v513_v49, %v620_v7  ;;  %v636_v13 = vsel %vm628_vm9, %v612_v3, %v632_v8 }
 0x13c   :  { %v656_v14 = vpack.c.bf16 %v624_v12, %v635_v58  ;;  %v661_v15 = vpack.c.bf16 %v636_v13, %v624_v12 }
 0x13e   :  { %v507_v16 = vpop.f32.mrf.mxu0  ;;  %v606_v17 = vpop.f32.mrf.mxu1  ;;  %1528 = vmatmul.msk.bf16.vlgmr.msra.gmra.mxu2 %vm224_vm3, %v661_v15  ;;  %1548 = vmatmul.msk.bf16.vlgmr.msra.gmra.mxu3 %vm224_vm3, %v656_v14 }
 0x13f   :  { %v514_v22 = vadd.f32 %v507_v16, %v305_v20  ;;  %v613_v23 = vadd.f32 %v606_v17, %v415_v21 }
 0x141   :  { %v621_v24 = vmul.f32 0.2, %v514_v22  ;;  %v633_v25 = vmul.f32 0.2, %v613_v23  ;;  %vm617_vm10 = vcmp.ge.f32.partialorder %v514_v22, 0.0  ;;  %vm629_vm11 = vcmp.ge.f32.partialorder %v613_v23, 0.0 }
 0x143   :  { %v625_v29 = vsel %vm617_vm10, %v514_v22, %v621_v24  ;;  %v637_v30 = vsel %vm629_vm11, %v613_v23, %v633_v25 }
 0x144   :  { %v662_v34 = vpack.c.bf16 %v637_v30, %v625_v29  ;;  %v657_v37 = vpack.c.bf16 %v625_v29, %v636_v13 }
 0x146   :  { %1575 = vmatmul.msk.bf16.vlgmr.msra.gmra.mxu0 %vm224_vm3, %v656_v14  ;;  %1595 = vmatmul.msk.bf16.vlgmr.msra.gmra.mxu1 %vm224_vm3, %v660_v60  ;;  %v509_v38 = vpop.f32.mrf.mxu0  ;;  %v608_v40 = vpop.f32.mrf.mxu1 }
 0x147   :  { %v515_v43 = vadd.f32 %v509_v38, %v306_v41  ;;  %v614_v44 = vadd.f32 %v608_v40, %v416_v42 }
 0x149   :  { %v622_v45 = vmul.f32 0.2, %v515_v43  ;;  %v634_v46 = vmul.f32 0.2, %v614_v44  ;;  %vm618_vm12 = vcmp.ge.f32.partialorder %v515_v43, 0.0  ;;  %vm630_vm13 = vcmp.ge.f32.partialorder %v614_v44, 0.0 }
 0x14b   :  { %v626_v35 = vsel %vm618_vm12, %v515_v43, %v622_v45  ;;  %v638_v36 = vsel %vm630_vm13, %v614_v44, %v634_v46 }
 0x14c   :  { %v663_v47 = vpack.c.bf16 %v638_v36, %v626_v35  ;;  %v658_v48 = vpack.c.bf16 %v626_v35, %v637_v30  ;;  %v659_v51 = vpack.c.bf16 0.0, %v638_v36 }
 0x14e   :  { %1529 = vmatmul.msk.bf16.gmra.mxu2 %vm224_vm3, %v662_v34  ;;  %1549 = vmatmul.msk.bf16.gmra.mxu3 %vm224_vm3, %v657_v37 }
 0x156   :  { %1576 = vmatmul.msk.bf16.gmra.mxu0 %vm224_vm3, %v657_v37  ;;  %1596 = vmatmul.msk.bf16.gmra.mxu1 %vm224_vm3, %v661_v15  ;;  %v2228_v15 = vld [vmem:[%s2333_s15] ss:$0 sm:$0xff] }
 0x15e   :  { %1530 = vmatmul.msk.bf16.gmra.mxu2 %vm224_vm3, %v663_v47  ;;  %1550 = vmatmul.msk.bf16.gmra.mxu3 %vm224_vm3, %v658_v48 }
 0x166   :  { %1577 = vmatmul.msk.bf16.gmra.mxu0 %vm224_vm3, %v658_v48  ;;  %1597 = vmatmul.msk.bf16.gmra.mxu1 %vm224_vm3, %v662_v34 }
 0x16e   :  { %1054 = vmatmul.bf16.vlgmr.msrb.gmra.mxu2 %v1735_v39  ;;  %1179 = vmatmul.bf16.vlgmr.msrb.gmra.mxu3 %v1739_v50 }
 0x176   :  { %1578 = vmatmul.msk.bf16.gmra.mxu0 %vm224_vm3, %v659_v51  ;;  %1598 = vmatmul.msk.bf16.gmra.mxu1 %vm224_vm3, %v663_v47 }
 0x17e   :  { %1059 = vmatmul.bf16.gmra.mxu2 %v1736_v52  ;;  %1184 = vmatmul.bf16.gmra.mxu3 %v1740_v53 }
 0x18e   :  { %1064 = vmatmul.bf16.gmra.mxu2 %v1737_v54  ;;  %1189 = vmatmul.bf16.gmra.mxu3 %v1741_v55 }
 0x19e   :  { %1069 = vmatmul.bf16.gmra.mxu2 %v1738_v56  ;;  %1194 = vmatmul.bf16.gmra.mxu3 %v1742_v57 }
 0x1b3   :  { %v727_v60 = vpop.f32.mrf.mxu0  ;;  %v792_v61 = vpop.f32.mrf.mxu1 }
 0x1b4   :  { %v793_v13 = vadd.f32 %v792_v61, %v727_v60 }
 0x1b6   :  { %v816_v18 = vadd.f32 %v2228_v15, %v793_v13 }
 0x1bb   :  { %v729_v0 = vpop.f32.mrf.mxu0  ;;  %v794_v1 = vpop.f32.mrf.mxu1 }
 0x1bc   :  { %v795_v24 = vadd.f32 %v794_v1, %v729_v0 }
 0x1be   :  { %v817_v30 = vadd.f32 %v2228_v15, %v795_v24 }
 0x1c1   :  { %v732_v58 = vpop.f32.mrf.mxu2  ;;  %v797_v59 = vpop.f32.mrf.mxu3 }
 0x1c2   :  { %v798_v40 = vadd.f32 %v797_v59, %v732_v58 }
 0x1c3   :  { %v877_v5 = vpop.f32.mrf.mxu0  ;;  %v930_v6 = vpop.f32.mrf.mxu1 }
 0x1c4   :  { %v931_v14 = vadd.f32 %v930_v6, %v877_v5  ;;  %v818_v47 = vadd.f32 %v2228_v15, %v798_v40 }
 0x1c6   :  { %v950_v19 = vadd.f32 %v2228_v15, %v931_v14 }
 0x1c9   :  { %v2205_v62 = vpop.f32.mrf.mxu2  ;;  %v2207_v63 = vpop.f32.mrf.mxu3 }
 0x1ca   :  { %v800_v56 = vadd.f32 %v2207_v63, %v2205_v62 }
 0x1cb   :  { %v879_v9 = vpop.f32.mrf.mxu0  ;;  %v932_v10 = vpop.f32.mrf.mxu1 }
 0x1cc   :  { %v933_v25 = vadd.f32 %v932_v10, %v879_v9  ;;  %v819_v6 = vadd.f32 %v2228_v15, %v800_v56 }
 0x1ce   :  { %v951_v31 = vadd.f32 %v2228_v15, %v933_v25 }
 0x1d1   :  { %v2209_v2 = vpop.f32.mrf.mxu2  ;;  %v2211_v49 = vpop.f32.mrf.mxu3 }
 0x1d3   :  { %v882_v16 = vpop.f32.mrf.mxu0  ;;  %v935_v17 = vpop.f32.mrf.mxu1 }
 0x1d4   :  { %v936_v41 = vadd.f32 %v935_v17, %v882_v16  ;;  %v803_v16 = vadd.f32 %v2211_v49, %v2209_v2 }
 0x1d6   :  { %v952_v48 = vadd.f32 %v2228_v15, %v936_v41 }
 0x1d9   :  { %v2213_v3 = vpop.f32.mrf.mxu2  ;;  %v2215_v4 = vpop.f32.mrf.mxu3 }
 0x1db   :  { %v884_v28 = vpop.f32.mrf.mxu0  ;;  %v937_v29 = vpop.f32.mrf.mxu1 }
 0x1dc   :  { %v938_v57 = vadd.f32 %v937_v29, %v884_v28 }
 0x1de   :  { %v953_v9 = vadd.f32 %v2228_v15, %v938_v57 }
 0x1e1   :  { %v2217_v7 = vpop.f32.mrf.mxu2  ;;  %v2219_v8 = vpop.f32.mrf.mxu3 }
 0x1e3   :  { %v887_v51 = vpop.f32.mrf.mxu0  ;;  %v940_v52 = vpop.f32.mrf.mxu1 }
 0x1e4   :  { %v941_v17 = vadd.f32 %v940_v52, %v887_v51 }
 0x1e6   :  { %v954_v28 = vadd.f32 %v2228_v15, %v941_v17 }
 0x1e9   :  { %v2221_v11 = vpop.f32.mrf.mxu2  ;;  %v2223_v12 = vpop.f32.mrf.mxu3 }
 0x1f1   :  { %v1055_v20 = vpop.f32.mrf.mxu2  ;;  %v1180_v21 = vpop.f32.mrf.mxu3 }
 0x1f2   :  { %v1075_v22 = vadd.f32 %v1055_v20, %v816_v18  ;;  %v1200_v23 = vadd.f32 %v1180_v21, %v950_v19  ;;  %v889_v18 = vpop.f32.mrf.mxu0  ;;  %v942_v19 = vpop.f32.mrf.mxu1 }
 0x1f4   :  { %v1208_v26 = vmul.f32 0.5, %v1075_v22  ;;  %v1240_v27 = vmul.f32 0.5, %v1200_v23 }
 0x1f6   :  { %1787 = vtanh.f32 %v1208_v26 }
 0x1f7   :  { %1789 = vtanh.f32 %v1240_v27  ;;  %v820_v27 = vadd.f32 %v2228_v15, %v803_v16 }
 0x1f9   :  { %v1057_v32 = vpop.f32.mrf.mxu2  ;;  %v1182_v33 = vpop.f32.mrf.mxu3 }
 0x1fa   :  { %v1076_v34 = vadd.f32 %v1057_v32, %v817_v30  ;;  %v1201_v37 = vadd.f32 %v1182_v33, %v951_v31  ;;  %v805_v32 = vadd.f32 %v2215_v4, %v2213_v3  ;;  %v943_v33 = vadd.f32 %v942_v19, %v889_v18  ;;  %v892_v41 = vpop.f32.mrf.mxu0 }
 0x1fc   :  { %v1788_v38 = vpop.eup %1787  ;;  %v1209_v42 = vmul.f32 0.5, %v1076_v34  ;;  %v1241_v43 = vmul.f32 0.5, %v1201_v37 }
 0x1fd   :  { %v1790_v44 = vpop.eup %1789  ;;  %v1224_v45 = vadd.f32 1.0, %v1788_v38 }
 0x1fe   :  { %v1256_v46 = vadd.f32 1.0, %v1790_v44  ;;  %1791 = vtanh.f32 %v1209_v42  ;;  %v945_v42 = vpop.f32.mrf.mxu1 }
 0x1ff   :  { %v1232_v35 = vmul.f32 0.5, %v1224_v45  ;;  %1793 = vtanh.f32 %v1241_v43 }
 0x200   :  { %v1264_v36 = vmul.f32 0.5, %v1256_v46  ;;  %v821_v46 = vadd.f32 %v2228_v15, %v805_v32 }
 0x201   :  { %1273 = vst.msk [vmem:[%s2336_s16] sm:$0xff] %vm1272_vm14, %v1232_v35  ;;  %v1060_v39 = vpop.f32.mrf.mxu2  ;;  %v1185_v50 = vpop.f32.mrf.mxu3  ;;  %v955_v35 = vadd.f32 %v2228_v15, %v943_v33 }
 0x202   :  { %1274 = vst.msk [vmem:[%s2336_s16 + $0x8] sm:$0xff] %vm1272_vm14, %v1264_v36  ;;  %v1077_v53 = vadd.f32 %v1060_v39, %v818_v47  ;;  %v1202_v54 = vadd.f32 %v1185_v50, %v952_v48  ;;  %v808_v39 = vadd.f32 %v2219_v8, %v2217_v7  ;;  %v946_v50 = vadd.f32 %v945_v42, %v892_v41  ;;  %v894_v57 = vpop.f32.mrf.mxu0 }
 0x204   :  { %v1792_v55 = vpop.eup %1791  ;;  %v1210_v58 = vmul.f32 0.5, %v1077_v53  ;;  %v1242_v59 = vmul.f32 0.5, %v1202_v54 }
 0x205   :  { %v1794_v60 = vpop.eup %1793  ;;  %v1225_v61 = vadd.f32 1.0, %v1792_v55 }
 0x206   :  { %v1257_v0 = vadd.f32 1.0, %v1794_v60  ;;  %1795 = vtanh.f32 %v1210_v58  ;;  %v947_v58 = vpop.f32.mrf.mxu1  ;;  %v822_v60 = vadd.f32 %v2228_v15, %v808_v39 }
 0x207   :  { %v1233_v1 = vmul.f32 0.5, %v1225_v61  ;;  %1797 = vtanh.f32 %v1242_v59  ;;  %v956_v61 = vadd.f32 %v2228_v15, %v946_v50 }
 0x208   :  { %v1265_v5 = vmul.f32 0.5, %v1257_v0 }
 0x209   :  { %1275 = vst.msk [vmem:[%s2336_s16 + $0x10] sm:$0xff] %vm1272_vm14, %v1233_v1  ;;  %v1062_v62 = vpop.f32.mrf.mxu2  ;;  %v1187_v63 = vpop.f32.mrf.mxu3 }
 0x20a   :  { %1276 = vst.msk [vmem:[%s2336_s16 + $0x18] sm:$0xff] %vm1272_vm14, %v1265_v5  ;;  %v1078_v10 = vadd.f32 %v1062_v62, %v819_v6  ;;  %v1203_v13 = vadd.f32 %v1187_v63, %v953_v9  ;;  %v810_v6 = vadd.f32 %v2223_v12, %v2221_v11  ;;  %v948_v9 = vadd.f32 %v947_v58, %v894_v57 }
 0x20c   :  { %v1796_v14 = vpop.eup %1795  ;;  %v1211_v20 = vmul.f32 0.5, %v1078_v10  ;;  %v1243_v21 = vmul.f32 0.5, %v1203_v13  ;;  %v823_v18 = vadd.f32 %v2228_v15, %v810_v6  ;;  %v957_v19 = vadd.f32 %v2228_v15, %v948_v9 }
 0x20d   :  { %v1798_v22 = vpop.eup %1797  ;;  %v1226_v23 = vadd.f32 1.0, %v1796_v14 }
 0x20e   :  { %v1258_v24 = vadd.f32 1.0, %v1798_v22  ;;  %1799 = vtanh.f32 %v1211_v20 }
 0x20f   :  { %v1234_v25 = vmul.f32 0.5, %v1226_v23  ;;  %1801 = vtanh.f32 %v1243_v21 }
 0x210   :  { %v1266_v26 = vmul.f32 0.5, %v1258_v24 }
 0x211   :  { %1277 = vst.msk [vmem:[%s2336_s16 + $0x20] sm:$0xff] %vm1272_vm14, %v1234_v25  ;;  %v1065_v2 = vpop.f32.mrf.mxu2  ;;  %v1190_v49 = vpop.f32.mrf.mxu3 }
 0x212   :  { %1278 = vst.msk [vmem:[%s2336_s16 + $0x28] sm:$0xff] %vm1272_vm14, %v1266_v26  ;;  %v1079_v29 = vadd.f32 %v1065_v2, %v820_v27  ;;  %v1204_v30 = vadd.f32 %v1190_v49, %v954_v28 }
 0x214   :  { %v1800_v31 = vpop.eup %1799  ;;  %v1212_v34 = vmul.f32 0.5, %v1079_v29  ;;  %v1244_v37 = vmul.f32 0.5, %v1204_v30 }
 0x215   :  { %v1802_v38 = vpop.eup %1801  ;;  %v1227_v40 = vadd.f32 1.0, %v1800_v31 }
 0x216   :  { %v1259_v43 = vadd.f32 1.0, %v1802_v38  ;;  %1803 = vtanh.f32 %v1212_v34 }
 0x217   :  { %v1235_v44 = vmul.f32 0.5, %v1227_v40  ;;  %1805 = vtanh.f32 %v1244_v37 }
 0x218   :  { %v1267_v45 = vmul.f32 0.5, %v1259_v43 }
 0x219   :  { %1279 = vst.msk [vmem:[%s2336_s16 + $0x30] sm:$0xff] %vm1272_vm14, %v1235_v44  ;;  %v1067_v3 = vpop.f32.mrf.mxu2  ;;  %v1192_v4 = vpop.f32.mrf.mxu3 }
 0x21a   :  { %1280 = vst.msk [vmem:[%s2336_s16 + $0x38] sm:$0xff] %vm1272_vm14, %v1267_v45  ;;  %v1080_v36 = vadd.f32 %v1067_v3, %v821_v46  ;;  %v1205_v47 = vadd.f32 %v1192_v4, %v955_v35 }
 0x21c   :  { %v1804_v48 = vpop.eup %1803  ;;  %v1213_v51 = vmul.f32 0.5, %v1080_v36  ;;  %v1245_v52 = vmul.f32 0.5, %v1205_v47 }
 0x21d   :  { %v1806_v53 = vpop.eup %1805  ;;  %v1228_v54 = vadd.f32 1.0, %v1804_v48 }
 0x21e   :  { %v1260_v55 = vadd.f32 1.0, %v1806_v53  ;;  %1807 = vtanh.f32 %v1213_v51 }
 0x21f   :  { %v1236_v56 = vmul.f32 0.5, %v1228_v54  ;;  %1809 = vtanh.f32 %v1245_v52 }
 0x220   :  { %v1268_v59 = vmul.f32 0.5, %v1260_v55 }
 0x221   :  { %1281 = vst.msk [vmem:[%s2336_s16 + $0x40] sm:$0xff] %vm1272_vm14, %v1236_v56  ;;  %v1070_v7 = vpop.f32.mrf.mxu2  ;;  %v1195_v8 = vpop.f32.mrf.mxu3 }
 0x222   :  { %1282 = vst.msk [vmem:[%s2336_s16 + $0x48] sm:$0xff] %vm1272_vm14, %v1268_v59  ;;  %v1081_v0 = vadd.f32 %v1070_v7, %v822_v60  ;;  %v1206_v1 = vadd.f32 %v1195_v8, %v956_v61 }
 0x224   :  { %v1808_v5 = vpop.eup %1807  ;;  %v1214_v62 = vmul.f32 0.5, %v1081_v0  ;;  %v1246_v63 = vmul.f32 0.5, %v1206_v1 }
 0x225   :  { %v1810_v10 = vpop.eup %1809  ;;  %v1229_v13 = vadd.f32 1.0, %v1808_v5 }
 0x226   :  { %v1261_v14 = vadd.f32 1.0, %v1810_v10  ;;  %1811 = vtanh.f32 %v1214_v62 }
 0x227   :  { %v1237_v16 = vmul.f32 0.5, %v1229_v13  ;;  %1813 = vtanh.f32 %v1246_v63 }
 0x228   :  { %v1269_v17 = vmul.f32 0.5, %v1261_v14 }
 0x229   :  { %1283 = vst.msk [vmem:[%s2336_s16 + $0x50] sm:$0xff] %vm1272_vm14, %v1237_v16  ;;  %v1072_v11 = vpop.f32.mrf.mxu2  ;;  %v1197_v12 = vpop.f32.mrf.mxu3 }
 0x22a   :  { %1284 = vst.msk [vmem:[%s2336_s16 + $0x58] sm:$0xff] %vm1272_vm14, %v1269_v17  ;;  %v1082_v20 = vadd.f32 %v1072_v11, %v823_v18  ;;  %v1207_v21 = vadd.f32 %v1197_v12, %v957_v19 }
 0x22c   :  { %v1812_v22 = vpop.eup %1811  ;;  %v1215_v23 = vmul.f32 0.5, %v1082_v20  ;;  %v1247_v24 = vmul.f32 0.5, %v1207_v21 }
 0x22d   :  { %v1814_v25 = vpop.eup %1813  ;;  %v1230_v26 = vadd.f32 1.0, %v1812_v22 }
 0x22e   :  { %v1262_v15 = vadd.f32 1.0, %v1814_v25  ;;  %1815 = vtanh.f32 %v1215_v23 }
 0x22f   :  { %v1238_v27 = vmul.f32 0.5, %v1230_v26  ;;  %1817 = vtanh.f32 %v1247_v24 }
 0x230   :  { %v1270_v28 = vmul.f32 0.5, %v1262_v15 }
 0x231   :  { %1285 = vst.msk [vmem:[%s2336_s16 + $0x60] sm:$0xff] %vm1272_vm14, %v1238_v27 }
 0x232   :  { %1286 = vst.msk [vmem:[%s2336_s16 + $0x68] sm:$0xff] %vm1272_vm14, %v1270_v28 }
 0x234   :  { %v1816_v2 = vpop.eup %1815 }
 0x235   :  { %v1818_v49 = vpop.eup %1817  ;;  %v1231_v29 = vadd.f32 1.0, %v1816_v2 }
 0x236   :  { %v1263_v30 = vadd.f32 1.0, %v1818_v49 }
 0x237   :  { %v1239_v31 = vmul.f32 0.5, %v1231_v29 }
 0x238   :  { %v1271_v32 = vmul.f32 0.5, %v1263_v30 }
 0x239   :  { %1287 = vst.msk [vmem:[%s2336_s16 + $0x70] sm:$0xff] %vm1272_vm14, %v1239_v31 }
 0x23a   :  { %1288 = vst.msk [vmem:[%s2336_s16 + $0x78] sm:$0xff] %vm1272_vm14, %v1271_v32 }

</bundles_post_ra>
